<compile_context>
chip_gen: v5e
topology: v5e:2x2
jax: 0.10.0
libtpu: 0.0.40
codegen_flags: <defaults>
</compile_context>

<pallas_src>
import math

import jax
import jax.numpy as jnp
from jax import lax
from jax.experimental import pallas as pl
from jax.experimental.pallas import tpu as pltpu


# ---------------------------------------------------------------------------
# Stage 1: time-parallel input projection.  x is flattened to [T*B, H] so this
# is one big matmul instead of T tiny ones inside the recurrence.
# ---------------------------------------------------------------------------
def proj_kernel(x_ref, w_ref, b_ref, o_ref):
    o_ref[...] = (
        jnp.dot(x_ref[...], w_ref[...], preferred_element_type=jnp.float32)
        + b_ref[...]
    ).astype(o_ref.dtype)


def _row_block(n_rows, max_rows=1024):
    # Legal under the (8,128) rule: either the full row count, or a divisor of
    # n_rows that is a multiple of 8.
    if n_rows <= max_rows:
        return n_rows
    for rb in range(max_rows, 7, -1):
        if n_rows % rb == 0 and rb % 8 == 0:
            return rb
    return n_rows


def input_projection(x_flat, w_ih_t, b_sum):
    n_rows, H = x_flat.shape
    rb = _row_block(n_rows)
    return pl.pallas_call(
        proj_kernel,
        out_shape=jax.ShapeDtypeStruct((n_rows, H), jnp.float32),
        grid_spec=pltpu.PrefetchScalarGridSpec(
            num_scalar_prefetch=0,
            grid=(n_rows // rb,),
            in_specs=[
                pl.BlockSpec((rb, H), lambda r: (r, 0)),   # x rows (chunked)
                pl.BlockSpec((H, H), lambda r: (0, 0)),    # W_ih^T
                pl.BlockSpec((1, H), lambda r: (0, 0)),    # b_ih + b_hh
            ],
            out_specs=pl.BlockSpec((rb, H), lambda r: (r, 0)),
        ),
        compiler_params=pltpu.CompilerParams(
            dimension_semantics=("parallel",)),
    )(x_flat, w_ih_t, b_sum)


# ---------------------------------------------------------------------------
# Stage 2: sequential recurrence, TT time steps per grid iteration.  Only one
# small (B,H)x(H,H) matmul + tanh per step remains on the serial path; the FC
# on the last hidden state runs once, on the final grid step.
# ---------------------------------------------------------------------------
def rnn_recurrence_kernel(px_ref, h0_ref, whh_ref, wfc_ref, bfc_ref,
                          logits_ref, hid_ref, h_scr):
    c = pl.program_id(0)

    @pl.when(c == 0)
    def _():
        h_scr[...] = h0_ref[...].astype(jnp.float32)

    tt = px_ref.shape[0]

    def step(t, h):
        pre = px_ref[t] + jnp.dot(h, whh_ref[...],
                                  preferred_element_type=jnp.float32)
        return jnp.tanh(pre)

    h = lax.fori_loop(0, tt, step, h_scr[...], unroll=True)
    h_scr[...] = h

    @pl.when(c == pl.num_programs(0) - 1)
    def _():
        hid_ref[...] = h.astype(hid_ref.dtype)
        logits_ref[...] = (
            jnp.dot(h, wfc_ref[...], preferred_element_type=jnp.float32)
            + bfc_ref[...]
        ).astype(logits_ref.dtype)


def _time_chunk(T, max_tt=32):
    for tt in range(min(T, max_tt), 0, -1):
        if T % tt == 0:
            return tt
    return 1


# ---------------------------------------------------------------------------
# Wrapper: embedding gather (data-dependent gather, done in plain JAX as glue),
# parameter plumbing, and the two pallas_calls.
# ---------------------------------------------------------------------------
def rnn_forward(tokens, params, hidden=None):
    B, T = tokens.shape
    H = params["embed"].shape[1]
    V = params["w_fc"].shape[0]

    # Embedding lookup, built time-major directly: (T, B, H).
    x_tbh = jnp.take(params["embed"], tokens.T, axis=0).astype(jnp.float32)

    # PyTorch stores weights as (out, in); pre-transpose so kernels do x @ W^T.
    wih_t = params["w_ih"].T.astype(jnp.float32)              # (H, H)
    whh_t = params["w_hh"].T.astype(jnp.float32)              # (H, H)
    wfc_t = params["w_fc"].T.astype(jnp.float32)              # (H, V)
    b_sum = (params["b_ih"] + params["b_hh"]).reshape(1, H).astype(jnp.float32)
    bfc = params["b_fc"].reshape(1, V).astype(jnp.float32)

    # Stage 1: hoisted input projection (one big matmul over T*B rows).
    pre_x = input_projection(x_tbh.reshape(T * B, H), wih_t, b_sum)
    pre_x = pre_x.reshape(T, B, H)

    h0 = (jnp.zeros((B, H), jnp.float32) if hidden is None
          else hidden.reshape(B, H).astype(jnp.float32))

    TT = _time_chunk(T)

    logits, h_last = pl.pallas_call(
        rnn_recurrence_kernel,
        out_shape=(jax.ShapeDtypeStruct((B, V), jnp.float32),
                   jax.ShapeDtypeStruct((B, H), jnp.float32)),
        grid_spec=pltpu.PrefetchScalarGridSpec(
            num_scalar_prefetch=0,
            grid=(T // TT,),
            in_specs=[
                pl.BlockSpec((TT, B, H), lambda c: (c, 0, 0)),  # pre_x chunk
                pl.BlockSpec((B, H), lambda c: (0, 0)),         # h0
                pl.BlockSpec((H, H), lambda c: (0, 0)),         # W_hh^T
                pl.BlockSpec((H, V), lambda c: (0, 0)),         # W_fc^T
                pl.BlockSpec((1, V), lambda c: (0, 0)),         # b_fc
            ],
            out_specs=(pl.BlockSpec((B, V), lambda c: (0, 0)),
                       pl.BlockSpec((B, H), lambda c: (0, 0))),
            scratch_shapes=[pltpu.VMEM((B, H), jnp.float32)],
        ),
        compiler_params=pltpu.CompilerParams(
            dimension_semantics=("arbitrary",)),
    )(pre_x, h0, whh_t, wfc_t, bfc)

    return logits, h_last[None]  # hidden: [1, B, H] like nn.RNN


# ---------------------------------------------------------------------------
# Pure-JAX reference (correctness check).
# ---------------------------------------------------------------------------
def rnn_forward_ref(tokens, params, hidden=None):
    x_emb = jnp.take(params["embed"], tokens, axis=0)  # (B, T, H)
    B, T, H = x_emb.shape
    h = (jnp.zeros((B, H), jnp.float32) if hidden is None
         else hidden.reshape(B, H))

    def step(h, x_t):
        h_new = jnp.tanh(x_t @ params["w_ih"].T + params["b_ih"]
                         + h @ params["w_hh"].T + params["b_hh"])
        return h_new, h_new

    h_last, _ = jax.lax.scan(step, h, jnp.transpose(x_emb, (1, 0, 2)))
    logits = h_last @ params["w_fc"].T + params["b_fc"]
    return logits, h_last[None]


def init_params(key, vocab_size, hidden_size):
    ks = jax.random.split(key, 7)
    s = 1.0 / math.sqrt(hidden_size)
    return {
        "embed": jax.random.normal(ks[0], (vocab_size, hidden_size), jnp.float32),
        "w_ih": jax.random.uniform(ks[1], (hidden_size, hidden_size), jnp.float32, -s, s),
        "w_hh": jax.random.uniform(ks[2], (hidden_size, hidden_size), jnp.float32, -s, s),
        "b_ih": jax.random.uniform(ks[3], (hidden_size,), jnp.float32, -s, s),
        "b_hh": jax.random.uniform(ks[4], (hidden_size,), jnp.float32, -s, s),
        "w_fc": jax.random.uniform(ks[5], (vocab_size, hidden_size), jnp.float32, -s, s),
        "b_fc": jax.random.uniform(ks[6], (vocab_size,), jnp.float32, -s, s),
    }


if __name__ == "__main__":
    vocab_size, hidden_size = 32, 32
    batch, seq = 2, 8

    key = jax.random.PRNGKey(0)
    k_param, k_tok = jax.random.split(key)
    params = init_params(k_param, vocab_size, hidden_size)
    tokens = jax.random.randint(k_tok, (batch, seq), 0, vocab_size, dtype=jnp.int32)

    logits, hidden = rnn_forward(tokens, params)
    jax.block_until_ready((logits, hidden))

    logits_ref, hidden_ref = rnn_forward_ref(tokens, params)
    assert logits.shape == (batch, vocab_size)
    assert hidden.shape == (1, batch, hidden_size)
    assert jnp.allclose(logits, logits_ref, atol=1e-5, rtol=1e-5)
    assert jnp.allclose(hidden, hidden_ref, atol=1e-5, rtol=1e-5)

    print("KERNEL_OK")
</pallas_src>

<mosaic_0001>
module attributes {stable_mosaic.version = 11 : i64} {
  func.func @proj_kernel(%arg0: i32, %arg1: memref<16x32xf32, #tpu.memory_space<vmem>>, %arg2: memref<32x32xf32, #tpu.memory_space<vmem>>, %arg3: memref<1x32xf32, #tpu.memory_space<vmem>>, %arg4: memref<16x32xf32, #tpu.memory_space<vmem>>) attributes {dimension_semantics = [#tpu.dimension_semantics<parallel>], iteration_bounds = array<i64: 1>, scalar_prefetch = 0 : i64, scratch_operands = 0 : i64, tpu.core_type = #tpu.core_type<tc>, window_params = [{transform_indices = @transform_0, window_bounds = array<i64: 16, 32>}, {pipeline_mode = #tpu.pipeline_mode<synchronous>, transform_indices = @transform_1, window_bounds = array<i64: 32, 32>}, {pipeline_mode = #tpu.pipeline_mode<synchronous>, transform_indices = @transform_2, window_bounds = array<i64: 1, 32>}, {transform_indices = @transform_3, window_bounds = array<i64: 16, 32>}]} {
    %c0 = arith.constant 0 : index
    %c0_0 = arith.constant 0 : index
    %0 = vector.load %arg1[%c0, %c0_0] : memref<16x32xf32, #tpu.memory_space<vmem>>, vector<16x32xf32>
    %c0_1 = arith.constant 0 : index
    %c0_2 = arith.constant 0 : index
    %1 = vector.load %arg2[%c0_1, %c0_2] : memref<32x32xf32, #tpu.memory_space<vmem>>, vector<32x32xf32>
    %cst = arith.constant dense<0.000000e+00> : vector<16x32xf32>
    %2 = tpu.matmul %0, %1, %cst {dimension_numbers = #tpu.dot_dimension_numbers<[1], [0], [0], [1], [0, 0, 1, 1], [], []>} : vector<16x32xf32>, vector<32x32xf32>, vector<16x32xf32> -> vector<16x32xf32>
    %c0_3 = arith.constant 0 : index
    %c0_4 = arith.constant 0 : index
    %3 = vector.load %arg3[%c0_3, %c0_4] : memref<1x32xf32, #tpu.memory_space<vmem>>, vector<1x32xf32>
    %4 = vector.broadcast %3 : vector<1x32xf32> to vector<16x32xf32>
    %5 = arith.addf %2, %4 : vector<16x32xf32>
    %c0_5 = arith.constant 0 : index
    %c0_6 = arith.constant 0 : index
    %6 = vector.load %arg4[%c0_5, %c0_6] : memref<16x32xf32, #tpu.memory_space<vmem>>, vector<16x32xf32>
    tpu.vector_store %arg4[%c0_5, %c0_6], %5 {strides = array<i32>} : memref<16x32xf32, #tpu.memory_space<vmem>>, vector<16x32xf32>,
    return
  }
  func.func @transform_0(%arg0: i32) -> (i32, i32) {
    %c0_i32 = arith.constant 0 : i32
    %c0_i32_0 = arith.constant 0 : i32
    return %arg0, %c0_i32 : i32, i32
  }
  func.func @transform_1(%arg0: i32) -> (i32, i32) {
    %c0_i32 = arith.constant 0 : i32
    %c0_i32_0 = arith.constant 0 : i32
    %c0_i32_1 = arith.constant 0 : i32
    return %c0_i32, %c0_i32_0 : i32, i32
  }
  func.func @transform_2(%arg0: i32) -> (i32, i32) {
    %c0_i32 = arith.constant 0 : i32
    %c0_i32_0 = arith.constant 0 : i32
    %c0_i32_1 = arith.constant 0 : i32
    return %c0_i32, %c0_i32_0 : i32, i32
  }
  func.func @transform_3(%arg0: i32) -> (i32, i32) {
    %c0_i32 = arith.constant 0 : i32
    %c0_i32_0 = arith.constant 0 : i32
    return %arg0, %c0_i32 : i32, i32
  }
}

</mosaic_0001>

<bundles_post_ra>
// kernel: tpu_custom_call.1
= control target key start
LH: loop header
LB: loop body
LE: loop exit
PB: predicated region body
PF: predicated region fallthrough
CT: control target
= control target key end

     0   :  { %8 = vsyncpa [#allocation3], 0  ;;  %s249_s0 = inlined_call_operand.hbm [shape: f32[16,32], index: 0, kind: input, shape index: {}]   ;;  %s250_s1 = inlined_call_operand.hbm [shape: f32[32,32], index: 1, kind: input, shape index: {}]   ;;  %s251_s2 = inlined_call_operand.vmem [shape: f32[1,32], index: 2, kind: input, shape index: {}]   ;;  %s252_s3 = inlined_call_operand.hbm [shape: f32[16,32], index: 3, kind: output, shape index: {}]  }
   0x1   :  { %9 = vsyncpa [#allocation6], 0 }
   0x2   :  { %10 = vsyncpa [#allocation4], 0  ;;  %s15_s14 = sshll.u32 %s249_s0, 4  ;;  %s199_s15 = smov [#allocation2]   ;;  %s16_s14 = int_to_ptr.hbm [resolvable:$true] %s15_s14 }
   0x3   :  { %s17_s16 = sshll.u32 %s199_s15, 4  ;;  %s28_s19 = sshll.u32 %s250_s1, 4  ;;  %s18_s16 = int_to_ptr.vmem [resolvable:$true] %s17_s16  ;;  %s29_s19 = int_to_ptr.hbm [resolvable:$true] %s28_s19 }
   0x4   :  { %s200_s20 = smov 128   ;;  %s201_s21 = smov 8  }
   0x5   :  { %23 = dma.hbm_to_vmem [thread:$0]  %s16_s14, 256, %s18_s16, [#allocation3], %s200_s20, %s200_s20, %s201_s21  }
   0x6   :  { %s202_s22 = smov [#allocation5]  }
   0x7   :  { %s30_s23 = sshll.u32 %s202_s22, 4  ;;  %s31_s23 = int_to_ptr.vmem [resolvable:$true] %s30_s23 }
   0x8   :  { %36 = dma.hbm_to_vmem [thread:$0]  %s29_s19, 512, %s31_s23, [#allocation6], %s200_s20, %s200_s20, %s201_s21  }
   0x9   :  { %193 = dma.done.wait [#allocation3], 256  }
   0xa   :  { %194 = vsyncadd [#allocation3], 4294967040 }
   0xb   :  { %195 = dma.done.wait [#allocation6], 512  }
   0xc   :  { %196 = vsyncadd [#allocation6], 4294966784  ;;  %v52_v0 = vld [vmem:[#allocation5 + $0x18] sm:$0xff]  ;;  %v51_v1 = vld [vmem:[#allocation5 + $0x10] sm:$0xff]  ;;  %vm57_vm0 = vcmask 261120   ;;  %s203_s24 = smov [#allocation7]  }
   0xd   :  { %76 = vmatpush.msra.mxu0 %v52_v0  ;;  %111 = vmatpush.msra.mxu1 %v52_v0  ;;  %v50_v2 = vld [vmem:[#allocation5 + $0x8] sm:$0xff]  ;;  %v49_v3 = vld [vmem:[#allocation5] sm:$0xff]  ;;  %v47_v4 = vld [vmem:[#allocation2] sm:$0xff]  ;;  %s93_s25 = sshll.u32 %s203_s24, 4  ;;  %s95_s28 = sshll.u32 %s252_s3, 4  ;;  %s94_s25 = int_to_ptr.vmem [resolvable:$true] %s93_s25  ;;  %s96_s28 = int_to_ptr.hbm [resolvable:$true] %s95_s28 }
   0xe   :  { %v48_v5 = vld [vmem:[#allocation2 + $0x8] sm:$0xff]  ;;  %v120_v6 = vld [vmem:[%s251_s2] ss:$0 sm:$0xff] }
   0xf   :  { %77 = vmatpush.msra.mxu0 %v51_v1  ;;  %112 = vmatpush.msra.mxu1 %v51_v1 }
  0x11   :  { %78 = vmatpush.msra.mxu0 %v50_v2  ;;  %113 = vmatpush.msra.mxu1 %v50_v2 }
  0x13   :  { %79 = vmatpush.msra.mxu0 %v49_v3  ;;  %114 = vmatpush.msra.mxu1 %v49_v3 }
  0x14   :  { %109 = vmatmul.msk.f32.vlgmr.msra.gmra.mxu0 %vm57_vm0, %v47_v4  ;;  %110 = vmatmul.msk.f32.vlgmr.msra.gmra.mxu1 %vm57_vm0, %v48_v5 }
  0x91   :  { %v81_v7 = vpop.f32.mrf.mxu0  ;;  %v84_v8 = vpop.f32.mrf.mxu1 }
  0x92   :  { %v82_v9 = vadd.f32 %v120_v6, %v81_v7  ;;  %v85_v10 = vadd.f32 %v120_v6, %v84_v8 }
  0x94   :  { %87 = vst.msk [vmem:[#allocation7] sm:$0xff] %vm57_vm0, %v82_v9 }
  0x95   :  { %88 = vst.msk [vmem:[#allocation7 + $0x8] sm:$0xff] %vm57_vm0, %v85_v10 }
  0x96   :  { %101 = dma.vmem_to_hbm [thread:$0]  %s94_s25, 256, %s96_s28, [#allocation4], %s200_s20, %s200_s20, %s201_s21  }
  0x97   :  { %197 = dma.done.wait [#allocation4], 256  }
  0x98   :  { %198 = vsyncadd [#allocation4], 4294967040 }
  0x99   :  { %106 = vsyncpa [#allocation3], 1 }
  0x9a   :  { %107 = vsyncpa [#allocation6], 1 }
  0x9b   :  { %108 = vsyncpa [#allocation4], 1 }

</bundles_post_ra>
